<compile_context>
chip_gen: v7x
topology: tpu7x:2x2x1
jax: 0.10.0
libtpu: 0.0.40
codegen_flags: <defaults>
</compile_context>

<pallas_src>
import functools

import jax
import jax.numpy as jnp
from jax.experimental import pallas as pl
from jax.experimental.pallas import tpu as pltpu

LN_EPS = 1e-5
LANE = 128


def _round_up(n, m):
    return ((n + m - 1) // m) * m


# ---------------------------------------------------------------------------
# Parameter preparation: done ONCE, outside the per-call hot path.
# ---------------------------------------------------------------------------
def prepare_mln_params(wr, br, wg, bg, wb, bb, *, compute_dtype=jnp.bfloat16):
    """Fuse / pad / cast MLN weights for the Pallas kernel.

    wr: (C, F), wg/wb: (F, F), biases: (F,).  Returns dict with
      wr  : (C, Fp)     compute_dtype
      br  : (1, Fp)     float32
      wgb : (Fp, 2*Fp)  compute_dtype   [Wg | Wb] fused, zero-padded
      bgb : (1, 2*Fp)   float32         [bg | bb] fused, zero-padded
    where Fp = F rounded up to a multiple of 128 (lane-dense stores/slices).
    """
    C, F = wr.shape
    Fp = _round_up(F, LANE)
    pad_f = Fp - F

    def pad2(w, rpad, cpad):
        return jnp.pad(w, ((0, rpad), (0, cpad))) if (rpad or cpad) else w

    wr_p = pad2(wr.astype(jnp.float32), 0, pad_f).astype(compute_dtype)
    wg_p = pad2(wg.astype(jnp.float32), pad_f, pad_f)
    wb_p = pad2(wb.astype(jnp.float32), pad_f, pad_f)
    wgb = jnp.concatenate([wg_p, wb_p], axis=1).astype(compute_dtype)

    br_p = jnp.pad(br.astype(jnp.float32), (0, pad_f)).reshape(1, Fp)
    bgb = jnp.concatenate(
        [jnp.pad(bg.astype(jnp.float32), (0, pad_f)),
         jnp.pad(bb.astype(jnp.float32), (0, pad_f))]).reshape(1, 2 * Fp)

    return {"wr": wr_p, "br": br_p, "wgb": wgb, "bgb": bgb,
            "c_dim": C, "f_dim": F}


# ---------------------------------------------------------------------------
# Kernel
# ---------------------------------------------------------------------------
def mln_kernel(x_ref, c_ref, wr_ref, br_ref, wgb_ref, bgb_ref, o_ref, *, f_dim):
    Fp = o_ref.shape[-1]
    inv_f = 1.0 / float(f_dim)

    # LayerNorm stats in one pass (f32).  Padded columns are zero, so sums
    # over Fp equal sums over the true f_dim columns; divide by true f_dim.
    x = x_ref[...].astype(jnp.float32)
    s1 = jnp.sum(x, axis=-1, keepdims=True)
    s2 = jnp.sum(x * x, axis=-1, keepdims=True)
    mean = s1 * inv_f
    var = jnp.maximum(s2 * inv_f - mean * mean, 0.0)
    inv_std = jax.lax.rsqrt(var + LN_EPS)

    # reduce: Linear(C -> F) + ReLU.  Both MXU dots in the weights' (bf16)
    # dtype with explicit casts on BOTH operands, f32 accumulation.
    wdt = wr_ref.dtype
    h = jnp.maximum(
        jnp.dot(c_ref[...].astype(wdt), wr_ref[...],
                preferred_element_type=jnp.float32) + br_ref[...],
        0.0)

    # Fused gamma|beta projection: one (Fp, 2*Fp) matmul.
    gb = jnp.dot(h.astype(wgb_ref.dtype), wgb_ref[...],
                 preferred_element_type=jnp.float32) + bgb_ref[...]

    # Modulation with the normalize folded in:
    #   gamma * (x - mean) * inv_std + beta
    # = (gamma * inv_std) * x + (beta - (gamma * inv_std) * mean)
    scale = gb[:, :Fp] * inv_std
    o_ref[...] = (scale * x + (gb[:, Fp:] - scale * mean)).astype(o_ref.dtype)


# ---------------------------------------------------------------------------
# Wrapper
# ---------------------------------------------------------------------------
def _vmem_footprint(tm, Fp, C, x_item, o_item, c_item, w_item):
    io = 2 * tm * (Fp * (x_item + o_item) + C * c_item)   # double-buffered tiles
    weights = (C * Fp + 2 * Fp * Fp) * w_item + 3 * Fp * 4  # single-buffered
    temps = 6 * tm * Fp * 4 + 2 * tm * C * 4               # live f32 temporaries
    return io + weights + temps


def mln_pallas(x, c, params, *, max_rows=2048, interpret=False):
    """x: (..., f_dim), c: (..., c_dim), params from prepare_mln_params()."""
    wr, br = params["wr"], params["br"]
    wgb, bgb = params["wgb"], params["bgb"]
    C, F = params["c_dim"], params["f_dim"]
    Fp = wr.shape[1]
    assert x.shape[-1] == F and c.shape[-1] == C
    assert x.shape[:-1] == c.shape[:-1]

    orig_shape = x.shape
    x2 = x.reshape(-1, F)
    c2 = c.reshape(-1, C)
    N = x2.shape[0]
    if Fp != F:  # keep output stores and gamma/beta slices lane-dense
        x2 = jnp.pad(x2, ((0, 0), (0, Fp - F)))

    # ---- row tile from this generation's real VMEM budget ----
    try:
        vmem_cap = int(pltpu.get_tpu_info().vmem_capacity_bytes)
    except Exception:
        vmem_cap = 64 * 1024 * 1024          # conservative (v7x per-TC VMEM)
    budget = (vmem_cap * 3) // 4

    x_item = x2.dtype.itemsize
    c_item = c2.dtype.itemsize
    w_item = wr.dtype.itemsize
    sub = 16 if x2.dtype == jnp.bfloat16 else 8

    tm = max(sub, min(_round_up(max_rows, sub), _round_up(N, sub)))
    while tm > sub and _vmem_footprint(
            tm, Fp, C, x_item, x_item, c_item, w_item) > budget:
        tm = _round_up(tm // 2, sub)
    # v7x has 2 TensorCores fed by the "parallel" axis: keep >= 2 grid steps.
    while tm > sub and pl.cdiv(N, tm) < 2:
        tm = _round_up(tm // 2, sub)
    # TODO(synk): for f_dim so large that even tm == sub cannot fit the
    # resident (Fp, 2*Fp) weight in VMEM (v7x, very large F), add a second
    # grid axis tiling the gamma/beta weight columns instead of keeping the
    # full fused weight resident.

    Np = _round_up(N, tm)
    if Np != N:
        x2 = jnp.pad(x2, ((0, Np - N), (0, 0)))
        c2 = jnp.pad(c2, ((0, Np - N), (0, 0)))
    grid = (Np // tm,)

    footprint = _vmem_footprint(tm, Fp, C, x_item, x_item, c_item, w_item)
    vmem_limit = int(min(max(footprint * 4 // 3, 32 * 1024 * 1024),
                         (vmem_cap * 15) // 16))

    kernel = functools.partial(mln_kernel, f_dim=F)

    def build(weight_mode):
        def const_spec(shape):
            if weight_mode is None:
                return pl.BlockSpec(shape, lambda i: (0, 0))
            return pl.BlockSpec(shape, lambda i: (0, 0),
                                pipeline_mode=weight_mode)

        return pl.pallas_call(
            kernel,
            out_shape=jax.ShapeDtypeStruct((Np, Fp), x.dtype),
            grid_spec=pltpu.PrefetchScalarGridSpec(
                num_scalar_prefetch=0,
                grid=grid,
                in_specs=[
                    pl.BlockSpec((tm, Fp), lambda i: (i, 0)),   # x row tile
                    pl.BlockSpec((tm, C), lambda i: (i, 0)),    # c row tile
                    const_spec((C, Fp)),                        # Wr (resident)
                    const_spec((1, Fp)),                        # br
                    const_spec((Fp, 2 * Fp)),                   # Wg|Wb fused
                    const_spec((1, 2 * Fp)),                    # bg|bb fused
                ],
                out_specs=pl.BlockSpec((tm, Fp), lambda i: (i, 0)),
            ),
            compiler_params=pltpu.CompilerParams(
                dimension_semantics=("parallel",),
                vmem_limit_bytes=vmem_limit),
            interpret=interpret,
        )

    try:
        # Constant-index weight blocks never change -> single-buffer them
        # (halves resident-weight VMEM; no prefetch overlap is needed).
        out = build(pl.Buffered(1))(x2, c2, wr, br, wgb, bgb)
    except Exception:
        # Fallback for JAX builds that reject buffer_count=1 on pallas_call.
        out = build(None)(x2, c2, wr, br, wgb, bgb)

    if Np != N or Fp != F:
        out = out[:N, :F]
    return out.reshape(orig_shape)


# ---------------------------------------------------------------------------
# Pure-JAX reference (matches the PyTorch module in f32).
# ---------------------------------------------------------------------------
def mln_ref(x, c, wr, br, wg, bg, wb, bb):
    xf = x.astype(jnp.float32)
    mean = jnp.mean(xf, axis=-1, keepdims=True)
    var = jnp.mean((xf - mean) ** 2, axis=-1, keepdims=True)
    x_ln = (xf - mean) / jnp.sqrt(var + LN_EPS)
    cf = c.astype(jnp.float32)
    h = jnp.maximum(cf @ wr.astype(jnp.float32) + br, 0.0)
    gamma = h @ wg.astype(jnp.float32) + bg
    beta = h @ wb.astype(jnp.float32) + bb
    return (gamma * x_ln + beta).astype(x.dtype)


if __name__ == "__main__":
    key = jax.random.PRNGKey(0)
    kx, kc, kwr, kbr, kwg, kbg, kwb, kbb = jax.random.split(key, 8)

    # Small shapes consistent with the module: batch=2, seq=8, c_dim=32, f_dim=128
    batch, seq = 2, 8
    c_dim, f_dim = 32, 128

    x = jax.random.normal(kx, (batch, seq, f_dim), dtype=jnp.float32)
    c = jax.random.normal(kc, (batch, seq, c_dim), dtype=jnp.float32)

    bound = 1.0 / (c_dim ** 0.5)
    wr = jax.random.uniform(kwr, (c_dim, f_dim), jnp.float32, -bound, bound)
    br = jax.random.uniform(kbr, (f_dim,), jnp.float32, -bound, bound)

    # Check 1: the module's reset_parameters() init (gamma W=0/b=1, beta W=0/b=0)
    # -> output must equal LayerNorm(x) (bf16 matmuls are exact here since the
    # gamma/beta weights are zero).
    wg0 = jnp.zeros((f_dim, f_dim), jnp.float32)
    bg0 = jnp.ones((f_dim,), jnp.float32)
    wb0 = jnp.zeros((f_dim, f_dim), jnp.float32)
    bb0 = jnp.zeros((f_dim,), jnp.float32)
    params0 = prepare_mln_params(wr, br, wg0, bg0, wb0, bb0)
    out = jax.block_until_ready(mln_pallas(x, c, params0))
    ref = mln_ref(x, c, wr, br, wg0, bg0, wb0, bb0)
    assert out.shape == x.shape
    assert jnp.allclose(out, ref, atol=1e-4, rtol=1e-4), (
        "check1 max err %e" % float(jnp.max(jnp.abs(out - ref))))

    # Check 2: random gamma/beta weights, exercising the fused bf16 (Fp, 2Fp)
    # matmul path (looser tolerance for bf16 inputs with f32 accumulation).
    wg = 0.05 * jax.random.normal(kwg, (f_dim, f_dim), jnp.float32)
    bg = jax.random.normal(kbg, (f_dim,), jnp.float32)
    wb = 0.05 * jax.random.normal(kwb, (f_dim, f_dim), jnp.float32)
    bb = jax.random.normal(kbb, (f_dim,), jnp.float32)
    params = prepare_mln_params(wr, br, wg, bg, wb, bb)
    out2 = jax.block_until_ready(mln_pallas(x, c, params))
    ref2 = mln_ref(x, c, wr, br, wg, bg, wb, bb)
    assert jnp.allclose(out2, ref2, atol=5e-2, rtol=5e-2), (
        "check2 max err %e" % float(jnp.max(jnp.abs(out2 - ref2))))

    print("KERNEL_OK")
</pallas_src>

<mosaic_0001>
module attributes {stable_mosaic.version = 11 : i64} {
  func.func @mln_kernel(%arg0: i32, %arg1: memref<8x128xf32, #tpu.memory_space<vmem>>, %arg2: memref<8x32xf32, #tpu.memory_space<vmem>>, %arg3: memref<32x128xbf16, #tpu.memory_space<vmem>>, %arg4: memref<1x128xf32, #tpu.memory_space<vmem>>, %arg5: memref<128x256xbf16, #tpu.memory_space<vmem>>, %arg6: memref<1x256xf32, #tpu.memory_space<vmem>>, %arg7: memref<8x128xf32, #tpu.memory_space<vmem>>) attributes {dimension_semantics = [#tpu.dimension_semantics<parallel>], iteration_bounds = array<i64: 2>, scalar_prefetch = 0 : i64, scratch_operands = 0 : i64, tpu.core_type = #tpu.core_type<tc>, window_params = [{transform_indices = @transform_0, window_bounds = array<i64: 8, 128>}, {transform_indices = @transform_1, window_bounds = array<i64: 8, 32>}, {pipeline_mode = #tpu.pipeline_mode<synchronous>, transform_indices = @transform_2, window_bounds = array<i64: 32, 128>}, {pipeline_mode = #tpu.pipeline_mode<synchronous>, transform_indices = @transform_3, window_bounds = array<i64: 1, 128>}, {pipeline_mode = #tpu.pipeline_mode<synchronous>, transform_indices = @transform_4, window_bounds = array<i64: 128, 256>}, {pipeline_mode = #tpu.pipeline_mode<synchronous>, transform_indices = @transform_5, window_bounds = array<i64: 1, 256>}, {transform_indices = @transform_6, window_bounds = array<i64: 8, 128>}]} {
    %c0 = arith.constant 0 : index
    %c0_0 = arith.constant 0 : index
    %0 = vector.load %arg1[%c0, %c0_0] : memref<8x128xf32, #tpu.memory_space<vmem>>, vector<8x128xf32>
    %cst = arith.constant dense<0.000000e+00> : vector<8xf32>
    %1 = vector.multi_reduction <add>, %0, %cst [1] : vector<8x128xf32> to vector<8xf32>
    %2 = vector.shape_cast %1 : vector<8xf32> to vector<8x1xf32>
    %3 = arith.mulf %0, %0 : vector<8x128xf32>
    %cst_1 = arith.constant dense<0.000000e+00> : vector<8xf32>
    %4 = vector.multi_reduction <add>, %3, %cst_1 [1] : vector<8x128xf32> to vector<8xf32>
    %5 = vector.shape_cast %4 : vector<8xf32> to vector<8x1xf32>
    %cst_2 = arith.constant 7.812500e-03 : f32
    %6 = vector.broadcast %cst_2 : f32 to vector<8x1xf32>
    %7 = arith.mulf %2, %6 : vector<8x1xf32>
    %cst_3 = arith.constant 7.812500e-03 : f32
    %8 = vector.broadcast %cst_3 : f32 to vector<8x1xf32>
    %9 = arith.mulf %5, %8 : vector<8x1xf32>
    %10 = arith.mulf %7, %7 : vector<8x1xf32>
    %11 = arith.subf %9, %10 : vector<8x1xf32>
    %cst_4 = arith.constant 0.000000e+00 : f32
    %12 = vector.broadcast %cst_4 : f32 to vector<8x1xf32>
    %13 = arith.maximumf %11, %12 : vector<8x1xf32>
    %cst_5 = arith.constant 9.99999974E-6 : f32
    %14 = vector.broadcast %cst_5 : f32 to vector<8x1xf32>
    %15 = arith.addf %13, %14 : vector<8x1xf32>
    %16 = math.rsqrt %15 : vector<8x1xf32>
    %c0_6 = arith.constant 0 : index
    %c0_7 = arith.constant 0 : index
    %17 = vector.load %arg2[%c0_6, %c0_7] : memref<8x32xf32, #tpu.memory_space<vmem>>, vector<8x32xf32>
    %18 = arith.truncf %17 : vector<8x32xf32> to vector<8x32xbf16>
    %c0_8 = arith.constant 0 : index
    %c0_9 = arith.constant 0 : index
    %19 = vector.load %arg3[%c0_8, %c0_9] : memref<32x128xbf16, #tpu.memory_space<vmem>>, vector<32x128xbf16>
    %cst_10 = arith.constant dense<0.000000e+00> : vector<8x128xf32>
    %20 = tpu.matmul %18, %19, %cst_10 {dimension_numbers = #tpu.dot_dimension_numbers<[1], [0], [0], [1], [0, 0, 1, 1], [], []>} : vector<8x32xbf16>, vector<32x128xbf16>, vector<8x128xf32> -> vector<8x128xf32>
    %c0_11 = arith.constant 0 : index
    %c0_12 = arith.constant 0 : index
    %21 = vector.load %arg4[%c0_11, %c0_12] : memref<1x128xf32, #tpu.memory_space<vmem>>, vector<1x128xf32>
    %22 = vector.broadcast %21 : vector<1x128xf32> to vector<8x128xf32>
    %23 = arith.addf %20, %22 : vector<8x128xf32>
    %cst_13 = arith.constant 0.000000e+00 : f32
    %24 = vector.broadcast %cst_13 : f32 to vector<8x128xf32>
    %25 = arith.maximumf %23, %24 : vector<8x128xf32>
    %26 = arith.truncf %25 : vector<8x128xf32> to vector<8x128xbf16>
    %c0_14 = arith.constant 0 : index
    %c0_15 = arith.constant 0 : index
    %27 = vector.load %arg5[%c0_14, %c0_15] : memref<128x256xbf16, #tpu.memory_space<vmem>>, vector<128x256xbf16>
    %cst_16 = arith.constant dense<0.000000e+00> : vector<8x256xf32>
    %28 = tpu.matmul %26, %27, %cst_16 {dimension_numbers = #tpu.dot_dimension_numbers<[1], [0], [0], [1], [0, 0, 1, 1], [], []>} : vector<8x128xbf16>, vector<128x256xbf16>, vector<8x256xf32> -> vector<8x256xf32>
    %c0_17 = arith.constant 0 : index
    %c0_18 = arith.constant 0 : index
    %29 = vector.load %arg6[%c0_17, %c0_18] : memref<1x256xf32, #tpu.memory_space<vmem>>, vector<1x256xf32>
    %30 = vector.broadcast %29 : vector<1x256xf32> to vector<8x256xf32>
    %31 = arith.addf %28, %30 : vector<8x256xf32>
    %32 = vector.extract_strided_slice %31 {offsets = [0, 0], sizes = [8, 128], strides = [1, 1]} : vector<8x256xf32> to vector<8x128xf32>
    %33 = vector.broadcast %16 : vector<8x1xf32> to vector<8x128xf32>
    %34 = arith.mulf %32, %33 : vector<8x128xf32>
    %35 = arith.mulf %34, %0 : vector<8x128xf32>
    %36 = vector.extract_strided_slice %31 {offsets = [0, 128], sizes = [8, 128], strides = [1, 1]} : vector<8x256xf32> to vector<8x128xf32>
    %37 = vector.broadcast %7 : vector<8x1xf32> to vector<8x128xf32>
    %38 = arith.mulf %34, %37 : vector<8x128xf32>
    %39 = arith.subf %36, %38 : vector<8x128xf32>
    %40 = arith.addf %35, %39 : vector<8x128xf32>
    %c0_19 = arith.constant 0 : index
    %c0_20 = arith.constant 0 : index
    %41 = vector.load %arg7[%c0_19, %c0_20] : memref<8x128xf32, #tpu.memory_space<vmem>>, vector<8x128xf32>
    tpu.vector_store %arg7[%c0_19, %c0_20], %40 {strides = array<i32>} : memref<8x128xf32, #tpu.memory_space<vmem>>, vector<8x128xf32>,
    return
  }
  func.func @transform_0(%arg0: i32) -> (i32, i32) {
    %c0_i32 = arith.constant 0 : i32
    %c0_i32_0 = arith.constant 0 : i32
    return %arg0, %c0_i32 : i32, i32
  }
  func.func @transform_1(%arg0: i32) -> (i32, i32) {
    %c0_i32 = arith.constant 0 : i32
    %c0_i32_0 = arith.constant 0 : i32
    return %arg0, %c0_i32 : i32, i32
  }
  func.func @transform_2(%arg0: i32) -> (i32, i32) {
    %c0_i32 = arith.constant 0 : i32
    %c0_i32_0 = arith.constant 0 : i32
    %c0_i32_1 = arith.constant 0 : i32
    return %c0_i32, %c0_i32_0 : i32, i32
  }
  func.func @transform_3(%arg0: i32) -> (i32, i32) {
    %c0_i32 = arith.constant 0 : i32
    %c0_i32_0 = arith.constant 0 : i32
    %c0_i32_1 = arith.constant 0 : i32
    return %c0_i32, %c0_i32_0 : i32, i32
  }
  func.func @transform_4(%arg0: i32) -> (i32, i32) {
    %c0_i32 = arith.constant 0 : i32
    %c0_i32_0 = arith.constant 0 : i32
    %c0_i32_1 = arith.constant 0 : i32
    return %c0_i32, %c0_i32_0 : i32, i32
  }
  func.func @transform_5(%arg0: i32) -> (i32, i32) {
    %c0_i32 = arith.constant 0 : i32
    %c0_i32_0 = arith.constant 0 : i32
    %c0_i32_1 = arith.constant 0 : i32
    return %c0_i32, %c0_i32_0 : i32, i32
  }
  func.func @transform_6(%arg0: i32) -> (i32, i32) {
    %c0_i32 = arith.constant 0 : i32
    %c0_i32_0 = arith.constant 0 : i32
    return %arg0, %c0_i32 : i32, i32
  }
}

module attributes {stable_mosaic.version = 11 : i64} {
  func.func @mln_kernel(%arg0: i32, %arg1: memref<8x128xf32, #tpu.memory_space<vmem>>, %arg2: memref<8x32xf32, #tpu.memory_space<vmem>>, %arg3: memref<32x128xbf16, #tpu.memory_space<vmem>>, %arg4: memref<1x128xf32, #tpu.memory_space<vmem>>, %arg5: memref<128x256xbf16, #tpu.memory_space<vmem>>, %arg6: memref<1x256xf32, #tpu.memory_space<vmem>>, %arg7: memref<8x128xf32, #tpu.memory_space<vmem>>) attributes {dimension_semantics = [#tpu.dimension_semantics<parallel>], iteration_bounds = array<i64: 2>, scalar_prefetch = 0 : i64, scratch_operands = 0 : i64, tpu.core_type = #tpu.core_type<tc>, window_params = [{transform_indices = @transform_0, window_bounds = array<i64: 8, 128>}, {transform_indices = @transform_1, window_bounds = array<i64: 8, 32>}, {pipeline_mode = #tpu.pipeline_mode<synchronous>, transform_indices = @transform_2, window_bounds = array<i64: 32, 128>}, {pipeline_mode = #tpu.pipeline_mode<synchronous>, transform_indices = @transform_3, window_bounds = array<i64: 1, 128>}, {pipeline_mode = #tpu.pipeline_mode<synchronous>, transform_indices = @transform_4, window_bounds = array<i64: 128, 256>}, {pipeline_mode = #tpu.pipeline_mode<synchronous>, transform_indices = @transform_5, window_bounds = array<i64: 1, 256>}, {transform_indices = @transform_6, window_bounds = array<i64: 8, 128>}]} {
    %c0 = arith.constant 0 : index
    %c0_0 = arith.constant 0 : index
    %0 = vector.load %arg1[%c0, %c0_0] : memref<8x128xf32, #tpu.memory_space<vmem>>, vector<8x128xf32>
    %cst = arith.constant dense<0.000000e+00> : vector<8xf32>
    %1 = vector.multi_reduction <add>, %0, %cst [1] : vector<8x128xf32> to vector<8xf32>
    %2 = vector.shape_cast %1 : vector<8xf32> to vector<8x1xf32>
    %3 = arith.mulf %0, %0 : vector<8x128xf32>
    %cst_1 = arith.constant dense<0.000000e+00> : vector<8xf32>
    %4 = vector.multi_reduction <add>, %3, %cst_1 [1] : vector<8x128xf32> to vector<8xf32>
    %5 = vector.shape_cast %4 : vector<8xf32> to vector<8x1xf32>
    %cst_2 = arith.constant 7.812500e-03 : f32
    %6 = vector.broadcast %cst_2 : f32 to vector<8x1xf32>
    %7 = arith.mulf %2, %6 : vector<8x1xf32>
    %cst_3 = arith.constant 7.812500e-03 : f32
    %8 = vector.broadcast %cst_3 : f32 to vector<8x1xf32>
    %9 = arith.mulf %5, %8 : vector<8x1xf32>
    %10 = arith.mulf %7, %7 : vector<8x1xf32>
    %11 = arith.subf %9, %10 : vector<8x1xf32>
    %cst_4 = arith.constant 0.000000e+00 : f32
    %12 = vector.broadcast %cst_4 : f32 to vector<8x1xf32>
    %13 = arith.maximumf %11, %12 : vector<8x1xf32>
    %cst_5 = arith.constant 9.99999974E-6 : f32
    %14 = vector.broadcast %cst_5 : f32 to vector<8x1xf32>
    %15 = arith.addf %13, %14 : vector<8x1xf32>
    %16 = math.rsqrt %15 : vector<8x1xf32>
    %c0_6 = arith.constant 0 : index
    %c0_7 = arith.constant 0 : index
    %17 = vector.load %arg2[%c0_6, %c0_7] : memref<8x32xf32, #tpu.memory_space<vmem>>, vector<8x32xf32>
    %18 = arith.truncf %17 : vector<8x32xf32> to vector<8x32xbf16>
    %c0_8 = arith.constant 0 : index
    %c0_9 = arith.constant 0 : index
    %19 = vector.load %arg3[%c0_8, %c0_9] : memref<32x128xbf16, #tpu.memory_space<vmem>>, vector<32x128xbf16>
    %cst_10 = arith.constant dense<0.000000e+00> : vector<8x128xf32>
    %20 = tpu.matmul %18, %19, %cst_10 {dimension_numbers = #tpu.dot_dimension_numbers<[1], [0], [0], [1], [0, 0, 1, 1], [], []>} : vector<8x32xbf16>, vector<32x128xbf16>, vector<8x128xf32> -> vector<8x128xf32>
    %c0_11 = arith.constant 0 : index
    %c0_12 = arith.constant 0 : index
    %21 = vector.load %arg4[%c0_11, %c0_12] : memref<1x128xf32, #tpu.memory_space<vmem>>, vector<1x128xf32>
    %22 = vector.broadcast %21 : vector<1x128xf32> to vector<8x128xf32>
    %23 = arith.addf %20, %22 : vector<8x128xf32>
    %cst_13 = arith.constant 0.000000e+00 : f32
    %24 = vector.broadcast %cst_13 : f32 to vector<8x128xf32>
    %25 = arith.maximumf %23, %24 : vector<8x128xf32>
    %26 = arith.truncf %25 : vector<8x128xf32> to vector<8x128xbf16>
    %c0_14 = arith.constant 0 : index
    %c0_15 = arith.constant 0 : index
    %27 = vector.load %arg5[%c0_14, %c0_15] : memref<128x256xbf16, #tpu.memory_space<vmem>>, vector<128x256xbf16>
    %cst_16 = arith.constant dense<0.000000e+00> : vector<8x256xf32>
    %28 = tpu.matmul %26, %27, %cst_16 {dimension_numbers = #tpu.dot_dimension_numbers<[1], [0], [0], [1], [0, 0, 1, 1], [], []>} : vector<8x128xbf16>, vector<128x256xbf16>, vector<8x256xf32> -> vector<8x256xf32>
    %c0_17 = arith.constant 0 : index
    %c0_18 = arith.constant 0 : index
    %29 = vector.load %arg6[%c0_17, %c0_18] : memref<1x256xf32, #tpu.memory_space<vmem>>, vector<1x256xf32>
    %30 = vector.broadcast %29 : vector<1x256xf32> to vector<8x256xf32>
    %31 = arith.addf %28, %30 : vector<8x256xf32>
    %32 = vector.extract_strided_slice %31 {offsets = [0, 0], sizes = [8, 128], strides = [1, 1]} : vector<8x256xf32> to vector<8x128xf32>
    %33 = vector.broadcast %16 : vector<8x1xf32> to vector<8x128xf32>
    %34 = arith.mulf %32, %33 : vector<8x128xf32>
    %35 = arith.mulf %34, %0 : vector<8x128xf32>
    %36 = vector.extract_strided_slice %31 {offsets = [0, 128], sizes = [8, 128], strides = [1, 1]} : vector<8x256xf32> to vector<8x128xf32>
    %37 = vector.broadcast %7 : vector<8x1xf32> to vector<8x128xf32>
    %38 = arith.mulf %34, %37 : vector<8x128xf32>
    %39 = arith.subf %36, %38 : vector<8x128xf32>
    %40 = arith.addf %35, %39 : vector<8x128xf32>
    %c0_19 = arith.constant 0 : index
    %c0_20 = arith.constant 0 : index
    %41 = vector.load %arg7[%c0_19, %c0_20] : memref<8x128xf32, #tpu.memory_space<vmem>>, vector<8x128xf32>
    tpu.vector_store %arg7[%c0_19, %c0_20], %40 {strides = array<i32>} : memref<8x128xf32, #tpu.memory_space<vmem>>, vector<8x128xf32>,
    return
  }
  func.func @transform_0(%arg0: i32) -> (i32, i32) {
    %c0_i32 = arith.constant 0 : i32
    %c0_i32_0 = arith.constant 0 : i32
    return %arg0, %c0_i32 : i32, i32
  }
  func.func @transform_1(%arg0: i32) -> (i32, i32) {
    %c0_i32 = arith.constant 0 : i32
    %c0_i32_0 = arith.constant 0 : i32
    return %arg0, %c0_i32 : i32, i32
  }
  func.func @transform_2(%arg0: i32) -> (i32, i32) {
    %c0_i32 = arith.constant 0 : i32
    %c0_i32_0 = arith.constant 0 : i32
    %c0_i32_1 = arith.constant 0 : i32
    return %c0_i32, %c0_i32_0 : i32, i32
  }
  func.func @transform_3(%arg0: i32) -> (i32, i32) {
    %c0_i32 = arith.constant 0 : i32
    %c0_i32_0 = arith.constant 0 : i32
    %c0_i32_1 = arith.constant 0 : i32
    return %c0_i32, %c0_i32_0 : i32, i32
  }
  func.func @transform_4(%arg0: i32) -> (i32, i32) {
    %c0_i32 = arith.constant 0 : i32
    %c0_i32_0 = arith.constant 0 : i32
    %c0_i32_1 = arith.constant 0 : i32
    return %c0_i32, %c0_i32_0 : i32, i32
  }
  func.func @transform_5(%arg0: i32) -> (i32, i32) {
    %c0_i32 = arith.constant 0 : i32
    %c0_i32_0 = arith.constant 0 : i32
    %c0_i32_1 = arith.constant 0 : i32
    return %c0_i32, %c0_i32_0 : i32, i32
  }
  func.func @transform_6(%arg0: i32) -> (i32, i32) {
    %c0_i32 = arith.constant 0 : i32
    %c0_i32_0 = arith.constant 0 : i32
    return %arg0, %c0_i32 : i32, i32
  }
}

</mosaic_0001>

<bundles_post_ra>
// kernel: tpu_custom_call.1
= control target key start
LH: loop header
LB: loop body
LE: loop exit
PB: predicated region body
PF: predicated region fallthrough
CT: control target
= control target key end

     0   :  { %s1381_s0 = inlined_call_operand.hbm [shape: f32[16,128], index: 0, kind: input, shape index: {}]   ;;  %s1382_s1 = inlined_call_operand.hbm [shape: f32[16,32], index: 1, kind: input, shape index: {}]   ;;  %s1383_s2 = inlined_call_operand.hbm [shape: bf16[32,128], index: 2, kind: input, shape index: {}]   ;;  %s1384_s3 = inlined_call_operand.vmem [shape: f32[1,128], index: 3, kind: input, shape index: {}]   ;;  %s1385_s4 = inlined_call_operand.hbm [shape: bf16[128,256], index: 4, kind: input, shape index: {}]   ;;  %s1386_s5 = inlined_call_operand.vmem [shape: f32[1,256], index: 5, kind: input, shape index: {}]   ;;  %s1387_s6 = inlined_call_operand.hbm [shape: f32[16,128], index: 6, kind: output, shape index: {}]  }
   0x1   :  { %1392 = sst [smem:[#allocation17_spill]] %s1383_s2 }
   0x2   :  { %1393 = sst [smem:[#allocation18_spill]] %s1385_s4 }
   0x3   :  { %11 = vsyncpa [#allocation3], 0 }
   0x4   :  { %13 = vsyncpa [#allocation3 + $0x1], 0 }
   0x5   :  { %14 = vsyncpa [#allocation6], 0 }
   0x6   :  { %16 = vsyncpa [#allocation6 + $0x1], 0 }
   0x7   :  { %17 = vsyncpa [#allocation9], 0 }
   0x8   :  { %18 = vsyncpa [#allocation4], 0 }
   0x9   :  { %20 = vsyncpa [#allocation4 + $0x1], 0  ;;  %s1099_s21 = smov 0   ;;  %s1101_s22 = smov 0  }
   0xa   :  { %s1103_s23 = smov 0   ;;  %s1105_s24 = smov 0  }
   0xb LB: > { %s1120_s25 = sadd.s32 4294967295, %s1050_s24   ;;  %s699_s26 = sadd.s32 4294967294, %s1050_s24   ;;  %s1050_s24 = sphi %s1105_s24, %s1417_s24   ;;  %s1046_s23 = sphi %s1103_s23, %s1416_s23   ;;  %s1042_s22 = sphi %s1101_s22, %s1415_s22   ;;  %s1038_s21 = sphi %s1099_s21, %s1414_s21  }
   0xc   : > { %p46_p0 = scmp.ne.s32.totalorder %s1042_s22, %s1038_s21  ;;  %p1388_p1 = scmp.eq.s32.totalorder %s1120_s25, 0 }
   0xd   : > { %p186_p3 = scmp.eq.s32.totalorder %s699_s26, 1  ;;  %p700_p5 = scmp.ge.s32.totalorder %s1050_s24, 1 }
   0xe   : > { %p1129_p4 = por %p1388_p1, %p46_p0  ;;  %p193_p7 = scmp.lt.s32.totalorder %s1050_s24, 3 }
   0xf   : > { %p1134_p6 = por %p186_p3, %p46_p0  ;;  %s1052_s30 = smov [#allocation7]  }
  0x10   : > { %s1394_s27 = scalar_select %p1129_p4, 1, 0 }
  0x11   : > { %s1395_s28 = scalar_select %p1134_p6, 1, 0 }
  0x12   : > { %p1139_p8 = pnand %p700_p5, %p193_p7  ;;  %s205_s7 = sshll.u32 %s1052_s30, 4  ;;  %s1143_s7 = int_to_ptr.vmem [resolvable:$true] %s205_s7 }
  0x13   : > { %s1053_s9 = smov [#allocation8]   ;;  %s1398_s2 = sld [smem:[#allocation17_spill]] }
  0x14   : > { %s1396_s29 = scalar_select %p1139_p8, 1, 0 }
  0x15   : > { %p763_p9 = pneg %p1139_p8  ;;  %s221_s10 = sshll.u32 %s1053_s9, 4  ;;  %s1154_s10 = int_to_ptr.vmem [resolvable:$true] %s221_s10 }
  0x17   : > { %p1150_p11 = pnand %p763_p9, %p1388_p1 }
  0x19   : > { %s856_s13 = scalar_lea.hbm %s1398_s2, 256  ;;  %p858_p13 = pneg %p1150_p11 }
  0x1a   : > { %p857_p12 = scmp.ne.s32.totalorder %s1398_s2, %s856_s13  ;;  %p863_p5 = scmp.lt.u32.totalorder %s856_s13, %s1398_s2 }
  0x1c   : > { %p859_p0 = pnand %p858_p13, %p857_p12 }
  0x1e   : > { %p860_p3 = pneg %p859_p0 }
  0x20   : > { %p865_p7 = pnand %p863_p5, %p860_p3 }
  0x22   : > { %868 = shalt.err (!%p865_p7)
}
  0x23   : > { %s869_s18 = scalar_lea.vmem %s1143_s7, 256  ;;  %p877_p2 = scmp.lt.s32.totalorder %s1143_s7, %s1143_s7 }
  0x24   : > { %p870_p9 = scmp.ne.s32.totalorder %s1143_s7, %s869_s18  ;;  %p878_p12 = scmp.lt.s32.totalorder %s869_s18, %s869_s18 }
  0x26   : > { %p872_p10 = pnand %p870_p9, %p858_p13  ;;  %p879_p0 = por %p878_p12, %p877_p2 }
  0x28   : > { %p873_p1 = pneg %p872_p10 }
  0x2a   : > { %p880_p6 = pnand %p879_p0, %p873_p1 }
  0x2c   : > { %883 = shalt.err (!%p880_p6)
}
  0x2d   : > { %s1054_s19 = smov 64   ;;  %s1055_s20 = smov 4  }
  0x2e   : > { %766 = dma.hbm_to_vmem [thread:$0]  (!%p1150_p11), %s1398_s2, 256, %s1143_s7, [#allocation6], %s1054_s19, %s1054_s19, %s1055_s20  }
  0x2f   : > { %s1399_s4 = sld [smem:[#allocation18_spill]] }
  0x35   : > { %s884_s12 = scalar_lea.hbm %s1399_s4, 2048 }
  0x36   : > { %p885_p2 = scmp.ne.s32.totalorder %s1399_s4, %s884_s12  ;;  %p891_p10 = scmp.lt.u32.totalorder %s884_s12, %s1399_s4 }
  0x38   : > { %p887_p1 = pnand %p885_p2, %p858_p13 }
  0x3a   : > { %p888_p6 = pneg %p887_p1 }
  0x3c   : > { %p893_p3 = pnand %p891_p10, %p888_p6 }
  0x3e   : > { %896 = shalt.err (!%p893_p3)
}
  0x3f   : > { %s897_s7 = scalar_lea.vmem %s1154_s10, 2048  ;;  %p905_p12 = scmp.lt.s32.totalorder %s1154_s10, %s1154_s10 }
  0x40   : > { %p898_p5 = scmp.ne.s32.totalorder %s1154_s10, %s897_s7  ;;  %p906_p0 = scmp.lt.s32.totalorder %s897_s7, %s897_s7 }
  0x42   : > { %p900_p7 = pnand %p898_p5, %p858_p13  ;;  %p907_p2 = por %p906_p0, %p905_p12 }
  0x44   : > { %p901_p9 = pneg %p900_p7 }
  0x46   : > { %p908_p1 = pnand %p907_p2, %p901_p9 }
  0x48   : > { %911 = shalt.err (!%p908_p1)
}
  0x49   : > { %s1056_s17 = smov 128   ;;  %s1057_s18 = smov 8  }
  0x4a   : > { %769 = dma.hbm_to_vmem [thread:$0]  (!%p1150_p11), %s1399_s4, 2048, %s1154_s10, [#allocation9], %s1056_s17, %s1056_s17, %s1057_s18  }
  0x4b   : > { %s1209_s26 = sadd.s32 1, %s1050_s24   ;;  %s33_s9 = sadd.s32 1, %s1046_s23 }
  0x4c   : > { %s30_s30 = ssub.s32 %s1050_s24, %s1209_s26  ;;  %p40_p6 = scmp.ne.s32.totalorder %s1046_s23, %s1042_s22 }
  0x4d   : > { %p31_p13 = scmp.eq.s32.totalorder %s30_s30, 0  ;;  %p41_p10 = scmp.eq.s32.totalorder %s1050_s24, 0 }
  0x4e   : > { %p1401_p5 = scmp.eq.s32.totalorder %s1120_s25, 1  ;;  %p783_p9 = scmp.lt.s32.totalorder %s1050_s24, 2 }
  0x4f   : > { %s1218_s11 = scalar_select %p31_p13, %s1046_s23, %s33_s9  }
  0x50   : > { %p42_p3 = por %p41_p10, %p40_p6  ;;  %p1222_p7 = por %p1401_p5, %p40_p6 }
  0x51   : > { %1400 = sst [smem:[#allocation16_spill]] %s1218_s11  ;;  %s238_s8 = sand.u32 1, %s1046_s23  }
  0x52   : > { %s1402_s12 = scalar_select %p1222_p7, 1, 0 }
  0x53   : > { %s1228_s10 = sshll.u32 %s238_s8, 3  ;;  %s705_s13 = sshll.u32 %s1050_s24, 7 }
  0x54   : > { %s1234_s16 = scalar_lea.hbm %s1381_s0, %s705_s13  ;;  %s242_s7 = scalar_lea.vmem [#allocation2], %s1228_s10 }
  0x55   : > { %s249_s17 = sshll.u32 %s242_s7, 4  ;;  %p1239_p11 = pnand %p783_p9, %p42_p3  ;;  %s1237_s17 = int_to_ptr.vmem [resolvable:$true] %s249_s17 }
  0x56   : > { %s1246_s30 = scalar_lea.hbm %s1382_s1, %s705_s13  ;;  %s256_s9 = sand.u32 1, %s1050_s24  }
  0x57   : > { %s239_s14 = scalar_lea.sflag [#allocation3], %s238_s8  ;;  %s912_s15 = scalar_lea.hbm %s1234_s16, 128 }
  0x58   : > { %p913_p12 = scmp.ne.s32.totalorder %s1234_s16, %s912_s15  ;;  %p914_p0 = pneg %p1239_p11 }
  0x59   : > { %s917_s4 = scalar_lea.hbm %s1381_s0, 256  ;;  %p918_p13 = scmp.lt.u32.totalorder %s1234_s16, %s1381_s0 }
  0x5a   : > { %p915_p2 = pnand %p914_p0, %p913_p12  ;;  %p919_p6 = scmp.lt.u32.totalorder %s917_s4, %s912_s15 }
  0x5b   : > { %p921_p3 = scmp.lt.u32.totalorder %s912_s15, %s1234_s16 }
  0x5c   : > { %p916_p1 = pneg %p915_p2  ;;  %p920_p10 = por %p919_p6, %p918_p13 }
  0x5e   : > { %p922_p5 = por %p921_p3, %p920_p10 }
  0x60   : > { %p923_p9 = pnand %p922_p5, %p916_p1 }
  0x62   : > { %926 = shalt.err (!%p923_p9)
}
  0x63   : > { %s927_s8 = scalar_lea.vmem %s1237_s17, 128  ;;  %s1058_s2 = smov [#allocation2]  }
  0x64   : > { %p928_p12 = scmp.ne.s32.totalorder %s1237_s17, %s927_s8  ;;  %s932_s13 = sshll.u32 %s1058_s2, 4  ;;  %s933_s13 = int_to_ptr.vmem [resolvable:$false] %s932_s13 }
  0x65   : > { %s934_s11 = scalar_lea.vmem %s933_s13, 256  ;;  %p935_p4 = scmp.lt.s32.totalorder %s1237_s17, %s933_s13 }
  0x66   : > { %p930_p2 = pnand %p928_p12, %p914_p0  ;;  %p936_p13 = scmp.lt.s32.totalorder %s934_s11, %s927_s8 }
  0x68   : > { %p931_p7 = pneg %p930_p2  ;;  %p937_p6 = por %p936_p13, %p935_p4 }
  0x6a   : > { %p938_p10 = pnand %p937_p6, %p931_p7 }
  0x6c   : > { %941 = shalt.err (!%p938_p10)
}
  0x6d   : > { %773 = dma.hbm_to_vmem [thread:$0]  (!%p1239_p11), %s1234_s16, 128, %s1237_s17, %s239_s14  }
  0x6e   : > { %s260_s4 = scalar_lea.vmem [#allocation5], %s1228_s10  ;;  %s257_s15 = scalar_lea.sflag [#allocation6], %s256_s9 }
  0x6f   : > { %s267_s20 = sshll.u32 %s260_s4, 4  ;;  %s942_s7 = scalar_lea.hbm %s1246_s30, 128  ;;  %s268_s20 = int_to_ptr.vmem [resolvable:$true] %s267_s20 }
  0x70   : > { %p943_p4 = scmp.ne.s32.totalorder %s1246_s30, %s942_s7  ;;  %s947_s2 = scalar_lea.hbm %s1382_s1, 256 }
  0x71   : > { %p948_p3 = scmp.lt.u32.totalorder %s1246_s30, %s1382_s1  ;;  %p949_p5 = scmp.lt.u32.totalorder %s947_s2, %s942_s7 }
  0x72   : > { %p945_p7 = pnand %p943_p4, %p914_p0  ;;  %p951_p12 = scmp.lt.u32.totalorder %s942_s7, %s1246_s30 }
  0x73   : > { %p950_p9 = por %p949_p5, %p948_p3 }
  0x74   : > { %p946_p1 = pneg %p945_p7 }
  0x75   : > { %p952_p2 = por %p951_p12, %p950_p9 }
  0x77   : > { %p953_p13 = pnand %p952_p2, %p946_p1 }
  0x79   : > { %956 = shalt.err (!%p953_p13)
}
  0x7a   : > { %s957_s10 = scalar_lea.vmem %s268_s20, 128  ;;  %s1059_s16 = smov [#allocation5]  }
  0x7b   : > { %p958_p6 = scmp.ne.s32.totalorder %s268_s20, %s957_s10  ;;  %s962_s17 = sshll.u32 %s1059_s16, 4  ;;  %s963_s17 = int_to_ptr.vmem [resolvable:$false] %s962_s17 }
  0x7c   : > { %s964_s9 = scalar_lea.vmem %s963_s17, 256  ;;  %p965_p7 = scmp.lt.s32.totalorder %s268_s20, %s963_s17 }
  0x7d   : > { %p960_p10 = pnand %p958_p6, %p914_p0  ;;  %p966_p8 = scmp.lt.s32.totalorder %s964_s9, %s957_s10 }
  0x7f   : > { %p961_p4 = pneg %p960_p10  ;;  %p967_p3 = por %p966_p8, %p965_p7 }
  0x81   : > { %p968_p5 = pnand %p967_p3, %p961_p4 }
  0x83   : > { %971 = shalt.err (!%p968_p5)
}
  0x84   : > { %776 = dma.hbm_to_vmem [thread:$0]  (!%p1239_p11), %s1246_s30, 128, %s268_s20, %s257_s15  }
  0x85   : > { %p1404_p1 = scmp.ne.s32.totalorder %s1396_s29, 0 }
  0x86   : > { %s1299_s14 = sand.u32 (!%p1404_p1), 1, %s1042_s22   ;;  %p1405_p8 = scmp.ne.s32.totalorder (!%p1404_p1), %s1394_s27, 0 }
  0x87   : > { %276 = sbr.rel (%p1404_p1) target bundleno = 616 (0x268), region = 44  ;;  %s1302_s4 = sshll.u32 (!%p1404_p1), %s1299_s14, 3 }
  0x88   : > { %s279_s7 = scalar_lea.sflag (!%p1404_p1), [#allocation3], %s1299_s14  ;;  %s282_s19 = scalar_lea.vmem (!%p1404_p1), [#allocation2], %s1302_s4 }
  0x8e   : > { %1017 = dma.done.wait (%p1405_p8), %s279_s7, 128  }
  0x8f   : > { %1019 = vsyncadd (%p1405_p8), %s279_s7, 4294967168  ;;  %s287_s29 = sand.u32 1, %s1120_s25   ;;  %s291_s30 = scalar_lea.vmem [#allocation5], %s1302_s4 }
  0x90   : > { %s288_s18 = scalar_lea.sflag [#allocation6], %s287_s29 }
  0x91   : > { %1021 = dma.done.wait (%p1405_p8), %s288_s18, 128  }
  0x92   : > { %1023 = vsyncadd (%p1405_p8), %s288_s18, 4294967168  ;;  %p1406_p11 = scmp.eq.s32.totalorder %s1120_s25, 0 }
  0x94   : > { %1025 = dma.done.wait (%p1406_p11), [#allocation6], 256   ;;  %p1407_p0 = pmov %p1406_p11 }
  0x96   : > { %1027 = vsyncadd (%p1407_p0), [#allocation6], 4294967040  ;;  %p1408_p9 = pmov %p1407_p0 }
  0x97   : > { %p1409_p12 = pmov %p1407_p0 }
  0x98   : > { %1029 = dma.done.wait (%p1408_p9), [#allocation9], 2048  }
  0x99   : > { %1031 = vsyncadd (%p1409_p12), [#allocation9], 4294965248  ;;  %v1060_v0 = vmov 0.0   ;;  %vm1061_vm0 = vmmov 0   ;;  %v828_v1 = vld [vmem:[#allocation7] sm:$0xff]   ;;  %v829_v2 = vld [vmem:[#allocation7 + $0x8] sm:$0xff]   ;;  %v436_v39 = vlaneseq }
  0x9a   : > { %741 = vmatprep.subr.bf16.mxu0 %v1060_v0  ;;  %745 = vmatprep.mubr.msk.bf16.mxu0 %vm1061_vm0, %v1060_v0  ;;  %v347_v3 = vld [vmem:[%s291_s30] sm:$0xff]  ;;  %v833_v6 = vld [vmem:[#allocation8 + $0x14] ss:$8 sps:$4 sm:$0xff]   ;;  %vm372_vm1 = vcmask 261120   ;;  %v835_v8 = vld [vmem:[#allocation8 + $0x10] ss:$8 sps:$4 sm:$0xff]  }
  0x9b   : > { %742 = vmatpush3.bf16.msra.mxu0 %v828_v1  ;;  %v830_v4 = vld [vmem:[#allocation8 + $0x4] ss:$8 sps:$4 sm:$0xff]   ;;  %v832_v5 = vld [vmem:[#allocation8] ss:$8 sps:$4 sm:$0xff]   ;;  %v348_v7 = vpack.c.bf16 %v347_v3, %v347_v3  ;;  %v839_v11 = vld [vmem:[#allocation8 + $0x34] ss:$8 sps:$4 sm:$0xff]  }
  0x9c   : > { %743 = vmatprep.subr.bf16.mxu0 %v1060_v0  ;;  %526 = vmatprep.subr.bf16.mxu1 %v830_v4  ;;  %v836_v9 = vld [vmem:[#allocation8 + $0x24] ss:$8 sps:$4 sm:$0xff]   ;;  %v838_v10 = vld [vmem:[#allocation8 + $0x20] ss:$8 sps:$4 sm:$0xff]   ;;  %v841_v12 = vld [vmem:[#allocation8 + $0x30] ss:$8 sps:$4 sm:$0xff]  }
  0x9d   : > { %527 = vmatpush1.bf16.msra.mxu1 %v832_v5  ;;  %v842_v13 = vld [vmem:[#allocation8 + $0x44] ss:$8 sps:$4 sm:$0xff]   ;;  %v844_v14 = vld [vmem:[#allocation8 + $0x40] ss:$8 sps:$4 sm:$0xff]   ;;  %v845_v15 = vld [vmem:[#allocation8 + $0x54] ss:$8 sps:$4 sm:$0xff]  }
  0x9e   : > { %528 = vmatprep.subr.bf16.mxu1 %v833_v6  ;;  %v847_v16 = vld [vmem:[#allocation8 + $0x50] ss:$8 sps:$4 sm:$0xff]   ;;  %v848_v17 = vld [vmem:[#allocation8 + $0x64] ss:$8 sps:$4 sm:$0xff]   ;;  %v850_v18 = vld [vmem:[#allocation8 + $0x60] ss:$8 sps:$4 sm:$0xff]  }
  0x9f   : > { %744 = vmatpush3.bf16.msra.mxu0 %v829_v2  ;;  %v851_v19 = vld [vmem:[#allocation8 + $0x74] ss:$8 sps:$4 sm:$0xff]   ;;  %v853_v20 = vld [vmem:[#allocation8 + $0x70] ss:$8 sps:$4 sm:$0xff]   ;;  %v1062_v21 = vmov 0   ;;  %v437_v41 = vshrl.u32 %v436_v39, 7 }
  0xa0   : > { %558 = vmatprep.mubr.bf16.mxu1 %v1062_v21  ;;  %v334_v22 = vld [vmem:[%s282_s19] sm:$0xff]  ;;  %s735_s2 = sshll.u32 %s1120_s25, 7  ;;  %s332_s13 = scalar_lea.vmem [#allocation10], %s1302_s4 }
  0xa1   : > { %529 = vmatpush1.bf16.msra.mxu1 %v835_v8  ;;  %335 = vadd.xlane.f32.xlu0 %v334_v22  ;;  %v337_v23 = vmul.f32 %v334_v22, %v334_v22  ;;  %v714_v24 = vld [vmem:[%s1384_s3] ss:$0 sm:$0xff]  ;;  %v438_v42 = vsub.s32 0, %v437_v41  ;;  %v442_v45 = vsub.s32 1, %v437_v41  ;;  %s587_s11 = sshll.u32 %s332_s13, 4  ;;  %s1337_s17 = scalar_lea.hbm %s1387_s6, %s735_s2  ;;  %s1339_s11 = int_to_ptr.vmem [resolvable:$true] %s587_s11 }
  0xa2   : > { %746 = vmatmul.mubr.msk.bf16.vlgmr.msra.gmra.mrb[0].mxu0 %vm372_vm1, %v348_v7  ;;  %530 = vmatprep.subr.bf16.mxu1 %v836_v9  ;;  %v434_v43 = vld [vmem:[%s1386_s5] sm:$0x3]  ;;  %s574_s9 = scalar_lea.sflag [#allocation4], %s1299_s14  ;;  %s972_s7 = scalar_lea.vmem %s1339_s11, 128 }
  0xa3   : > { %v439_v44 = vrot.slane %v434_v43, %v438_v42  ;;  %v443_v48 = vrot.slane %v434_v43, %v442_v45  ;;  %p973_p2 = scmp.ne.s32.totalorder %s1339_s11, %s972_s7  ;;  %p1410_p13 = scmp.ne.s32.totalorder %s1402_s12, 0 }
  0xa4   : > { %s1063_s25 = smov [#allocation10]  }
  0xa5   : > { %531 = vmatpush1.bf16.msra.mxu1 %v838_v10  ;;  %338 = vadd.xlane.f32.xlu0 %v337_v23  ;;  %p974_p6 = pnand %p973_p2, %p1410_p13  ;;  %s976_s4 = sshll.u32 %s1063_s25, 4  ;;  %s977_s4 = int_to_ptr.vmem [resolvable:$false] %s976_s4 }
  0xa6   : > { %532 = vmatprep.subr.bf16.mxu1 %v839_v11  ;;  %s978_s19 = scalar_lea.vmem %s977_s4, 256  ;;  %p979_p4 = scmp.lt.s32.totalorder %s1339_s11, %s977_s4 }
  0xa7   : > { %p975_p10 = pneg %p974_p6  ;;  %p980_p7 = scmp.lt.s32.totalorder %s978_s19, %s972_s7 }
  0xa9   : > { %533 = vmatpush1.bf16.msra.mxu1 %v841_v12  ;;  %p981_p3 = por %p980_p7, %p979_p4 }
  0xaa   : > { %534 = vmatprep.subr.bf16.mxu1 %v842_v13 }
  0xab   : > { %p982_p5 = pnand %p981_p3, %p975_p10 }
  0xad   : > { %535 = vmatpush1.bf16.msra.mxu1 %v844_v14 }
  0xae   : > { %536 = vmatprep.subr.bf16.mxu1 %v845_v15 }
  0xb1   : > { %537 = vmatpush1.bf16.msra.mxu1 %v847_v16 }
  0xb2   : > { %538 = vmatprep.subr.bf16.mxu1 %v848_v17 }
  0xb5   : > { %539 = vmatpush1.bf16.msra.mxu1 %v850_v18 }
  0xb6   : > { %540 = vmatprep.subr.bf16.mxu1 %v851_v19 }
  0xb9   : > { %541 = vmatpush1.bf16.msra.mxu1 %v853_v20 }
 0x12e   : > { %v336_v32 = vpop.xlane.xlu0 %335 }
 0x12f   : > { %v340_v33 = vmul.f32 0.0078125, %v336_v32 }
 0x131   : > { %v342_v35 = vmul.f32 %v340_v33, %v340_v33 }
 0x132   : > { %v339_v34 = vpop.xlane.xlu0 %338 }
 0x133   : > { %v341_v36 = vmul.f32 0.0078125, %v339_v34 }
 0x135   : > { %v343_v37 = vsub.f32 %v341_v36, %v342_v35 }
 0x137   : > { %v344_v38 = vmax.f32 %v343_v37, 0.0 }
 0x139   : > { %v345_v40 = vadd.f32 1e-05, %v344_v38 }
 0x13b   : > { %854 = vrsqrt.f32 %v345_v40 }
 0x145   : > { %v855_v50 = vpop.eup %854 }
 0x175   : > { %v410_v25 = vpop.f32.mrb[0].mxu0 }
 0x176   : > { %v411_v26 = vadd.f32 %v714_v24, %v410_v25  ;;  %v747_v27 = vpop.f32.mrb[1].mxu0 }
 0x177   : > { %v413_v28 = vpop.f32.mrb[2].mxu0 }
 0x178   : > { %v416_v29 = vmax.f32 %v411_v26, 0.0  ;;  %v748_v30 = vpop.f32.mrb[3].mxu0 }
 0x17a   : > { %v417_v31 = vpack.c.bf16 %v416_v29, %v416_v29 }
 0x17c   : > { %559 = vmatmul.mubr.bf16.vlgmr.msra.gmra.mrb[0].mxu1 %v417_v31 }
 0x24f   : > { %v560_v46 = vpop.f32.mrb[0].mxu1 }
 0x250   : > { %v561_v47 = vadd.f32 %v560_v46, %v439_v44  ;;  %v562_v49 = vpop.f32.mrb[1].mxu1 }
 0x251   : > { %v564_v51 = vpop.f32.mrb[2].mxu1  ;;  %v563_v54 = vadd.f32 %v562_v49, %v443_v48 }
 0x252   : > { %v567_v52 = vmul.f32 %v855_v50, %v561_v47  ;;  %v565_v53 = vpop.f32.mrb[3].mxu1 }
 0x254   : > { %v569_v55 = vmul.f32 %v567_v52, %v340_v33  ;;  %v568_v56 = vmul.f32 %v567_v52, %v334_v22 }
 0x256   : > { %v570_v57 = vsub.f32 %v563_v54, %v569_v55 }
 0x258   : > { %v571_v58 = vadd.f32 %v570_v57, %v568_v56 }
 0x25a   : > { %572 = vst [vmem:[%s332_s13] sm:$0xff] %v571_v58 }
 0x25b   : > { %985 = shalt.err (!%p982_p5)
}
 0x25c   : > { %s986_s14 = scalar_lea.hbm %s1337_s17, 128  ;;  %s990_s30 = scalar_lea.hbm %s1387_s6, 256 }
 0x25d   : > { %p987_p1 = scmp.ne.s32.totalorder %s1337_s17, %s986_s14  ;;  %p991_p0 = scmp.lt.u32.totalorder %s1337_s17, %s1387_s6 }
 0x25e   : > { %p992_p9 = scmp.lt.u32.totalorder %s990_s30, %s986_s14  ;;  %p994_p2 = scmp.lt.u32.totalorder %s986_s14, %s1337_s17 }
 0x25f   : > { %p988_p8 = pnand %p987_p1, %p1410_p13 }
 0x260   : > { %p993_p12 = por %p992_p9, %p991_p0 }
 0x261   : > { %p989_p11 = pneg %p988_p8 }
 0x262   : > { %p995_p6 = por %p994_p2, %p993_p12 }
 0x264   : > { %p996_p10 = pnand %p995_p6, %p989_p11 }
 0x266   : > { %999 = shalt.err (!%p996_p10)
}
 0x267   : > { %761 = dma.vmem_to_hbm [thread:$0]  (%p1410_p13), %s1339_s11, 128, %s1337_s17, %s574_s9  }
 0x268 PF: > { %s599_s15 = sand.u32 1, %s1038_s21   ;;  %p1411_p4 = scmp.ne.s32.totalorder %s1395_s28, 0 }
 0x269   : > { %p1412_p7 = scmp.ge.s32.totalorder %s1050_s24, 2  ;;  %s600_s8 = scalar_lea.sflag [#allocation4], %s599_s15 }
 0x26b   : > { %p778_p3 = pnand %p1412_p7, %p1411_p4 }
 0x26d   : > { %1033 = dma.done.wait (!%p778_p3), %s600_s8, 128  }
 0x26e   : > { %1035 = vsyncadd (!%p778_p3), %s600_s8, 4294967168  ;;  %s1413_s2 = sld [smem:[#allocation16_spill]]  ;;  %p23_p5 = scmp.ge.s32.totalorder %s1209_s26, 4  }
 0x26f   : > { %s1414_s21 = smov %s1042_s22  ;;  %s1415_s22 = smov %s1046_s23 }
 0x270   : > { %s1417_s24 = smov %s1209_s26  ;;  %25 = sbr.rel (!%p23_p5) target bundleno = 11 (0xb), region = 110 }
 0x274   : > { %s1416_s23 = smov %s1413_s2 }
 0x277   :  { %605 = vsyncpa [#allocation3], 1 }
 0x278   :  { %607 = vsyncpa [#allocation3 + $0x1], 1 }
 0x279   :  { %608 = vsyncpa [#allocation6], 1 }
 0x27a   :  { %610 = vsyncpa [#allocation6 + $0x1], 1 }
 0x27b   :  { %611 = vsyncpa [#allocation9], 1 }
 0x27c   :  { %612 = vsyncpa [#allocation4], 1 }
 0x27d   :  { %614 = vsyncpa [#allocation4 + $0x1], 1 }

// kernel: tpu_custom_call.1
= control target key start
LH: loop header
LB: loop body
LE: loop exit
PB: predicated region body
PF: predicated region fallthrough
CT: control target
= control target key end

     0   :  { %s1381_s0 = inlined_call_operand.hbm [shape: f32[16,128], index: 0, kind: input, shape index: {}]   ;;  %s1382_s1 = inlined_call_operand.hbm [shape: f32[16,32], index: 1, kind: input, shape index: {}]   ;;  %s1383_s2 = inlined_call_operand.hbm [shape: bf16[32,128], index: 2, kind: input, shape index: {}]   ;;  %s1384_s3 = inlined_call_operand.vmem [shape: f32[1,128], index: 3, kind: input, shape index: {}]   ;;  %s1385_s4 = inlined_call_operand.hbm [shape: bf16[128,256], index: 4, kind: input, shape index: {}]   ;;  %s1386_s5 = inlined_call_operand.vmem [shape: f32[1,256], index: 5, kind: input, shape index: {}]   ;;  %s1387_s6 = inlined_call_operand.hbm [shape: f32[16,128], index: 6, kind: output, shape index: {}]  }
   0x1   :  { %1392 = sst [smem:[#allocation17_spill]] %s1383_s2 }
   0x2   :  { %1393 = sst [smem:[#allocation18_spill]] %s1385_s4 }
   0x3   :  { %11 = vsyncpa [#allocation3], 0 }
   0x4   :  { %13 = vsyncpa [#allocation3 + $0x1], 0 }
   0x5   :  { %14 = vsyncpa [#allocation6], 0 }
   0x6   :  { %16 = vsyncpa [#allocation6 + $0x1], 0 }
   0x7   :  { %17 = vsyncpa [#allocation9], 0 }
   0x8   :  { %18 = vsyncpa [#allocation4], 0 }
   0x9   :  { %20 = vsyncpa [#allocation4 + $0x1], 0  ;;  %s1099_s21 = smov 0   ;;  %s1101_s22 = smov 0  }
   0xa   :  { %s1103_s23 = smov 0   ;;  %s1105_s24 = smov 0  }
   0xb LB: > { %s1120_s25 = sadd.s32 4294967295, %s1050_s24   ;;  %s699_s26 = sadd.s32 4294967294, %s1050_s24   ;;  %s1050_s24 = sphi %s1105_s24, %s1417_s24   ;;  %s1046_s23 = sphi %s1103_s23, %s1416_s23   ;;  %s1042_s22 = sphi %s1101_s22, %s1415_s22   ;;  %s1038_s21 = sphi %s1099_s21, %s1414_s21  }
   0xc   : > { %p46_p0 = scmp.ne.s32.totalorder %s1042_s22, %s1038_s21  ;;  %p1388_p1 = scmp.eq.s32.totalorder %s1120_s25, 0 }
   0xd   : > { %p186_p3 = scmp.eq.s32.totalorder %s699_s26, 1  ;;  %p700_p5 = scmp.ge.s32.totalorder %s1050_s24, 1 }
   0xe   : > { %p1129_p4 = por %p1388_p1, %p46_p0  ;;  %p193_p7 = scmp.lt.s32.totalorder %s1050_s24, 3 }
   0xf   : > { %p1134_p6 = por %p186_p3, %p46_p0  ;;  %s1052_s30 = smov [#allocation7]  }
  0x10   : > { %s1394_s27 = scalar_select %p1129_p4, 1, 0 }
  0x11   : > { %s1395_s28 = scalar_select %p1134_p6, 1, 0 }
  0x12   : > { %p1139_p8 = pnand %p700_p5, %p193_p7  ;;  %s205_s7 = sshll.u32 %s1052_s30, 4  ;;  %s1143_s7 = int_to_ptr.vmem [resolvable:$true] %s205_s7 }
  0x13   : > { %s1053_s9 = smov [#allocation8]   ;;  %s1398_s2 = sld [smem:[#allocation17_spill]] }
  0x14   : > { %s1396_s29 = scalar_select %p1139_p8, 1, 0 }
  0x15   : > { %p763_p9 = pneg %p1139_p8  ;;  %s221_s10 = sshll.u32 %s1053_s9, 4  ;;  %s1154_s10 = int_to_ptr.vmem [resolvable:$true] %s221_s10 }
  0x17   : > { %p1150_p11 = pnand %p763_p9, %p1388_p1 }
  0x19   : > { %s856_s13 = scalar_lea.hbm %s1398_s2, 256  ;;  %p858_p13 = pneg %p1150_p11 }
  0x1a   : > { %p857_p12 = scmp.ne.s32.totalorder %s1398_s2, %s856_s13  ;;  %p863_p5 = scmp.lt.u32.totalorder %s856_s13, %s1398_s2 }
  0x1c   : > { %p859_p0 = pnand %p858_p13, %p857_p12 }
  0x1e   : > { %p860_p3 = pneg %p859_p0 }
  0x20   : > { %p865_p7 = pnand %p863_p5, %p860_p3 }
  0x22   : > { %868 = shalt.err (!%p865_p7)
}
  0x23   : > { %s869_s18 = scalar_lea.vmem %s1143_s7, 256  ;;  %p877_p2 = scmp.lt.s32.totalorder %s1143_s7, %s1143_s7 }
  0x24   : > { %p870_p9 = scmp.ne.s32.totalorder %s1143_s7, %s869_s18  ;;  %p878_p12 = scmp.lt.s32.totalorder %s869_s18, %s869_s18 }
  0x26   : > { %p872_p10 = pnand %p870_p9, %p858_p13  ;;  %p879_p0 = por %p878_p12, %p877_p2 }
  0x28   : > { %p873_p1 = pneg %p872_p10 }
  0x2a   : > { %p880_p6 = pnand %p879_p0, %p873_p1 }
  0x2c   : > { %883 = shalt.err (!%p880_p6)
}
  0x2d   : > { %s1054_s19 = smov 64   ;;  %s1055_s20 = smov 4  }
  0x2e   : > { %766 = dma.hbm_to_vmem [thread:$0]  (!%p1150_p11), %s1398_s2, 256, %s1143_s7, [#allocation6], %s1054_s19, %s1054_s19, %s1055_s20  }
  0x2f   : > { %s1399_s4 = sld [smem:[#allocation18_spill]] }
  0x35   : > { %s884_s12 = scalar_lea.hbm %s1399_s4, 2048 }
  0x36   : > { %p885_p2 = scmp.ne.s32.totalorder %s1399_s4, %s884_s12  ;;  %p891_p10 = scmp.lt.u32.totalorder %s884_s12, %s1399_s4 }
  0x38   : > { %p887_p1 = pnand %p885_p2, %p858_p13 }
  0x3a   : > { %p888_p6 = pneg %p887_p1 }
  0x3c   : > { %p893_p3 = pnand %p891_p10, %p888_p6 }
  0x3e   : > { %896 = shalt.err (!%p893_p3)
}
  0x3f   : > { %s897_s7 = scalar_lea.vmem %s1154_s10, 2048  ;;  %p905_p12 = scmp.lt.s32.totalorder %s1154_s10, %s1154_s10 }
  0x40   : > { %p898_p5 = scmp.ne.s32.totalorder %s1154_s10, %s897_s7  ;;  %p906_p0 = scmp.lt.s32.totalorder %s897_s7, %s897_s7 }
  0x42   : > { %p900_p7 = pnand %p898_p5, %p858_p13  ;;  %p907_p2 = por %p906_p0, %p905_p12 }
  0x44   : > { %p901_p9 = pneg %p900_p7 }
  0x46   : > { %p908_p1 = pnand %p907_p2, %p901_p9 }
  0x48   : > { %911 = shalt.err (!%p908_p1)
}
  0x49   : > { %s1056_s17 = smov 128   ;;  %s1057_s18 = smov 8  }
  0x4a   : > { %769 = dma.hbm_to_vmem [thread:$0]  (!%p1150_p11), %s1399_s4, 2048, %s1154_s10, [#allocation9], %s1056_s17, %s1056_s17, %s1057_s18  }
  0x4b   : > { %s1209_s26 = sadd.s32 1, %s1050_s24   ;;  %s33_s9 = sadd.s32 1, %s1046_s23 }
  0x4c   : > { %s30_s30 = ssub.s32 %s1050_s24, %s1209_s26  ;;  %p40_p6 = scmp.ne.s32.totalorder %s1046_s23, %s1042_s22 }
  0x4d   : > { %p31_p13 = scmp.eq.s32.totalorder %s30_s30, 0  ;;  %p41_p10 = scmp.eq.s32.totalorder %s1050_s24, 0 }
  0x4e   : > { %p1401_p5 = scmp.eq.s32.totalorder %s1120_s25, 1  ;;  %p783_p9 = scmp.lt.s32.totalorder %s1050_s24, 2 }
  0x4f   : > { %s1218_s11 = scalar_select %p31_p13, %s1046_s23, %s33_s9  }
  0x50   : > { %p42_p3 = por %p41_p10, %p40_p6  ;;  %p1222_p7 = por %p1401_p5, %p40_p6 }
  0x51   : > { %1400 = sst [smem:[#allocation16_spill]] %s1218_s11  ;;  %s238_s8 = sand.u32 1, %s1046_s23  }
  0x52   : > { %s1402_s12 = scalar_select %p1222_p7, 1, 0 }
  0x53   : > { %s1228_s10 = sshll.u32 %s238_s8, 3  ;;  %s705_s13 = sshll.u32 %s1050_s24, 7 }
  0x54   : > { %s1234_s16 = scalar_lea.hbm %s1381_s0, %s705_s13  ;;  %s242_s7 = scalar_lea.vmem [#allocation2], %s1228_s10 }
  0x55   : > { %s249_s17 = sshll.u32 %s242_s7, 4  ;;  %p1239_p11 = pnand %p783_p9, %p42_p3  ;;  %s1237_s17 = int_to_ptr.vmem [resolvable:$true] %s249_s17 }
  0x56   : > { %s1246_s30 = scalar_lea.hbm %s1382_s1, %s705_s13  ;;  %s256_s9 = sand.u32 1, %s1050_s24  }
  0x57   : > { %s239_s14 = scalar_lea.sflag [#allocation3], %s238_s8  ;;  %s912_s15 = scalar_lea.hbm %s1234_s16, 128 }
  0x58   : > { %p913_p12 = scmp.ne.s32.totalorder %s1234_s16, %s912_s15  ;;  %p914_p0 = pneg %p1239_p11 }
  0x59   : > { %s917_s4 = scalar_lea.hbm %s1381_s0, 256  ;;  %p918_p13 = scmp.lt.u32.totalorder %s1234_s16, %s1381_s0 }
  0x5a   : > { %p915_p2 = pnand %p914_p0, %p913_p12  ;;  %p919_p6 = scmp.lt.u32.totalorder %s917_s4, %s912_s15 }
  0x5b   : > { %p921_p3 = scmp.lt.u32.totalorder %s912_s15, %s1234_s16 }
  0x5c   : > { %p916_p1 = pneg %p915_p2  ;;  %p920_p10 = por %p919_p6, %p918_p13 }
  0x5e   : > { %p922_p5 = por %p921_p3, %p920_p10 }
  0x60   : > { %p923_p9 = pnand %p922_p5, %p916_p1 }
  0x62   : > { %926 = shalt.err (!%p923_p9)
}
  0x63   : > { %s927_s8 = scalar_lea.vmem %s1237_s17, 128  ;;  %s1058_s2 = smov [#allocation2]  }
  0x64   : > { %p928_p12 = scmp.ne.s32.totalorder %s1237_s17, %s927_s8  ;;  %s932_s13 = sshll.u32 %s1058_s2, 4  ;;  %s933_s13 = int_to_ptr.vmem [resolvable:$false] %s932_s13 }
  0x65   : > { %s934_s11 = scalar_lea.vmem %s933_s13, 256  ;;  %p935_p4 = scmp.lt.s32.totalorder %s1237_s17, %s933_s13 }
  0x66   : > { %p930_p2 = pnand %p928_p12, %p914_p0  ;;  %p936_p13 = scmp.lt.s32.totalorder %s934_s11, %s927_s8 }
  0x68   : > { %p931_p7 = pneg %p930_p2  ;;  %p937_p6 = por %p936_p13, %p935_p4 }
  0x6a   : > { %p938_p10 = pnand %p937_p6, %p931_p7 }
  0x6c   : > { %941 = shalt.err (!%p938_p10)
}
  0x6d   : > { %773 = dma.hbm_to_vmem [thread:$0]  (!%p1239_p11), %s1234_s16, 128, %s1237_s17, %s239_s14  }
  0x6e   : > { %s260_s4 = scalar_lea.vmem [#allocation5], %s1228_s10  ;;  %s257_s15 = scalar_lea.sflag [#allocation6], %s256_s9 }
  0x6f   : > { %s267_s20 = sshll.u32 %s260_s4, 4  ;;  %s942_s7 = scalar_lea.hbm %s1246_s30, 128  ;;  %s268_s20 = int_to_ptr.vmem [resolvable:$true] %s267_s20 }
  0x70   : > { %p943_p4 = scmp.ne.s32.totalorder %s1246_s30, %s942_s7  ;;  %s947_s2 = scalar_lea.hbm %s1382_s1, 256 }
  0x71   : > { %p948_p3 = scmp.lt.u32.totalorder %s1246_s30, %s1382_s1  ;;  %p949_p5 = scmp.lt.u32.totalorder %s947_s2, %s942_s7 }
  0x72   : > { %p945_p7 = pnand %p943_p4, %p914_p0  ;;  %p951_p12 = scmp.lt.u32.totalorder %s942_s7, %s1246_s30 }
  0x73   : > { %p950_p9 = por %p949_p5, %p948_p3 }
  0x74   : > { %p946_p1 = pneg %p945_p7 }
  0x75   : > { %p952_p2 = por %p951_p12, %p950_p9 }
  0x77   : > { %p953_p13 = pnand %p952_p2, %p946_p1 }
  0x79   : > { %956 = shalt.err (!%p953_p13)
}
  0x7a   : > { %s957_s10 = scalar_lea.vmem %s268_s20, 128  ;;  %s1059_s16 = smov [#allocation5]  }
  0x7b   : > { %p958_p6 = scmp.ne.s32.totalorder %s268_s20, %s957_s10  ;;  %s962_s17 = sshll.u32 %s1059_s16, 4  ;;  %s963_s17 = int_to_ptr.vmem [resolvable:$false] %s962_s17 }
  0x7c   : > { %s964_s9 = scalar_lea.vmem %s963_s17, 256  ;;  %p965_p7 = scmp.lt.s32.totalorder %s268_s20, %s963_s17 }
  0x7d   : > { %p960_p10 = pnand %p958_p6, %p914_p0  ;;  %p966_p8 = scmp.lt.s32.totalorder %s964_s9, %s957_s10 }
  0x7f   : > { %p961_p4 = pneg %p960_p10  ;;  %p967_p3 = por %p966_p8, %p965_p7 }
  0x81   : > { %p968_p5 = pnand %p967_p3, %p961_p4 }
  0x83   : > { %971 = shalt.err (!%p968_p5)
}
  0x84   : > { %776 = dma.hbm_to_vmem [thread:$0]  (!%p1239_p11), %s1246_s30, 128, %s268_s20, %s257_s15  }
  0x85   : > { %p1404_p1 = scmp.ne.s32.totalorder %s1396_s29, 0 }
  0x86   : > { %s1299_s14 = sand.u32 (!%p1404_p1), 1, %s1042_s22   ;;  %p1405_p8 = scmp.ne.s32.totalorder (!%p1404_p1), %s1394_s27, 0 }
  0x87   : > { %276 = sbr.rel (%p1404_p1) target bundleno = 616 (0x268), region = 44  ;;  %s1302_s4 = sshll.u32 (!%p1404_p1), %s1299_s14, 3 }
  0x88   : > { %s279_s7 = scalar_lea.sflag (!%p1404_p1), [#allocation3], %s1299_s14  ;;  %s282_s19 = scalar_lea.vmem (!%p1404_p1), [#allocation2], %s1302_s4 }
  0x8e   : > { %1017 = dma.done.wait (%p1405_p8), %s279_s7, 128  }
  0x8f   : > { %1019 = vsyncadd (%p1405_p8), %s279_s7, 4294967168  ;;  %s287_s29 = sand.u32 1, %s1120_s25   ;;  %s291_s30 = scalar_lea.vmem [#allocation5], %s1302_s4 }
  0x90   : > { %s288_s18 = scalar_lea.sflag [#allocation6], %s287_s29 }
  0x91   : > { %1021 = dma.done.wait (%p1405_p8), %s288_s18, 128  }
  0x92   : > { %1023 = vsyncadd (%p1405_p8), %s288_s18, 4294967168  ;;  %p1406_p11 = scmp.eq.s32.totalorder %s1120_s25, 0 }
  0x94   : > { %1025 = dma.done.wait (%p1406_p11), [#allocation6], 256   ;;  %p1407_p0 = pmov %p1406_p11 }
  0x96   : > { %1027 = vsyncadd (%p1407_p0), [#allocation6], 4294967040  ;;  %p1408_p9 = pmov %p1407_p0 }
  0x97   : > { %p1409_p12 = pmov %p1407_p0 }
  0x98   : > { %1029 = dma.done.wait (%p1408_p9), [#allocation9], 2048  }
  0x99   : > { %1031 = vsyncadd (%p1409_p12), [#allocation9], 4294965248  ;;  %v1060_v0 = vmov 0.0   ;;  %vm1061_vm0 = vmmov 0   ;;  %v828_v1 = vld [vmem:[#allocation7] sm:$0xff]   ;;  %v829_v2 = vld [vmem:[#allocation7 + $0x8] sm:$0xff]   ;;  %v436_v39 = vlaneseq }
  0x9a   : > { %741 = vmatprep.subr.bf16.mxu0 %v1060_v0  ;;  %745 = vmatprep.mubr.msk.bf16.mxu0 %vm1061_vm0, %v1060_v0  ;;  %v347_v3 = vld [vmem:[%s291_s30] sm:$0xff]  ;;  %v833_v6 = vld [vmem:[#allocation8 + $0x14] ss:$8 sps:$4 sm:$0xff]   ;;  %vm372_vm1 = vcmask 261120   ;;  %v835_v8 = vld [vmem:[#allocation8 + $0x10] ss:$8 sps:$4 sm:$0xff]  }
  0x9b   : > { %742 = vmatpush3.bf16.msra.mxu0 %v828_v1  ;;  %v830_v4 = vld [vmem:[#allocation8 + $0x4] ss:$8 sps:$4 sm:$0xff]   ;;  %v832_v5 = vld [vmem:[#allocation8] ss:$8 sps:$4 sm:$0xff]   ;;  %v348_v7 = vpack.c.bf16 %v347_v3, %v347_v3  ;;  %v839_v11 = vld [vmem:[#allocation8 + $0x34] ss:$8 sps:$4 sm:$0xff]  }
  0x9c   : > { %743 = vmatprep.subr.bf16.mxu0 %v1060_v0  ;;  %526 = vmatprep.subr.bf16.mxu1 %v830_v4  ;;  %v836_v9 = vld [vmem:[#allocation8 + $0x24] ss:$8 sps:$4 sm:$0xff]   ;;  %v838_v10 = vld [vmem:[#allocation8 + $0x20] ss:$8 sps:$4 sm:$0xff]   ;;  %v841_v12 = vld [vmem:[#allocation8 + $0x30] ss:$8 sps:$4 sm:$0xff]  }
  0x9d   : > { %527 = vmatpush1.bf16.msra.mxu1 %v832_v5  ;;  %v842_v13 = vld [vmem:[#allocation8 + $0x44] ss:$8 sps:$4 sm:$0xff]   ;;  %v844_v14 = vld [vmem:[#allocation8 + $0x40] ss:$8 sps:$4 sm:$0xff]   ;;  %v845_v15 = vld [vmem:[#allocation8 + $0x54] ss:$8 sps:$4 sm:$0xff]  }
  0x9e   : > { %528 = vmatprep.subr.bf16.mxu1 %v833_v6  ;;  %v847_v16 = vld [vmem:[#allocation8 + $0x50] ss:$8 sps:$4 sm:$0xff]   ;;  %v848_v17 = vld [vmem:[#allocation8 + $0x64] ss:$8 sps:$4 sm:$0xff]   ;;  %v850_v18 = vld [vmem:[#allocation8 + $0x60] ss:$8 sps:$4 sm:$0xff]  }
  0x9f   : > { %744 = vmatpush3.bf16.msra.mxu0 %v829_v2  ;;  %v851_v19 = vld [vmem:[#allocation8 + $0x74] ss:$8 sps:$4 sm:$0xff]   ;;  %v853_v20 = vld [vmem:[#allocation8 + $0x70] ss:$8 sps:$4 sm:$0xff]   ;;  %v1062_v21 = vmov 0   ;;  %v437_v41 = vshrl.u32 %v436_v39, 7 }
  0xa0   : > { %558 = vmatprep.mubr.bf16.mxu1 %v1062_v21  ;;  %v334_v22 = vld [vmem:[%s282_s19] sm:$0xff]  ;;  %s735_s2 = sshll.u32 %s1120_s25, 7  ;;  %s332_s13 = scalar_lea.vmem [#allocation10], %s1302_s4 }
  0xa1   : > { %529 = vmatpush1.bf16.msra.mxu1 %v835_v8  ;;  %335 = vadd.xlane.f32.xlu0 %v334_v22  ;;  %v337_v23 = vmul.f32 %v334_v22, %v334_v22  ;;  %v714_v24 = vld [vmem:[%s1384_s3] ss:$0 sm:$0xff]  ;;  %v438_v42 = vsub.s32 0, %v437_v41  ;;  %v442_v45 = vsub.s32 1, %v437_v41  ;;  %s587_s11 = sshll.u32 %s332_s13, 4  ;;  %s1337_s17 = scalar_lea.hbm %s1387_s6, %s735_s2  ;;  %s1339_s11 = int_to_ptr.vmem [resolvable:$true] %s587_s11 }
  0xa2   : > { %746 = vmatmul.mubr.msk.bf16.vlgmr.msra.gmra.mrb[0].mxu0 %vm372_vm1, %v348_v7  ;;  %530 = vmatprep.subr.bf16.mxu1 %v836_v9  ;;  %v434_v43 = vld [vmem:[%s1386_s5] sm:$0x3]  ;;  %s574_s9 = scalar_lea.sflag [#allocation4], %s1299_s14  ;;  %s972_s7 = scalar_lea.vmem %s1339_s11, 128 }
  0xa3   : > { %v439_v44 = vrot.slane %v434_v43, %v438_v42  ;;  %v443_v48 = vrot.slane %v434_v43, %v442_v45  ;;  %p973_p2 = scmp.ne.s32.totalorder %s1339_s11, %s972_s7  ;;  %p1410_p13 = scmp.ne.s32.totalorder %s1402_s12, 0 }
  0xa4   : > { %s1063_s25 = smov [#allocation10]  }
  0xa5   : > { %531 = vmatpush1.bf16.msra.mxu1 %v838_v10  ;;  %338 = vadd.xlane.f32.xlu0 %v337_v23  ;;  %p974_p6 = pnand %p973_p2, %p1410_p13  ;;  %s976_s4 = sshll.u32 %s1063_s25, 4  ;;  %s977_s4 = int_to_ptr.vmem [resolvable:$false] %s976_s4 }
  0xa6   : > { %532 = vmatprep.subr.bf16.mxu1 %v839_v11  ;;  %s978_s19 = scalar_lea.vmem %s977_s4, 256  ;;  %p979_p4 = scmp.lt.s32.totalorder %s1339_s11, %s977_s4 }
  0xa7   : > { %p975_p10 = pneg %p974_p6  ;;  %p980_p7 = scmp.lt.s32.totalorder %s978_s19, %s972_s7 }
  0xa9   : > { %533 = vmatpush1.bf16.msra.mxu1 %v841_v12  ;;  %p981_p3 = por %p980_p7, %p979_p4 }
  0xaa   : > { %534 = vmatprep.subr.bf16.mxu1 %v842_v13 }
  0xab   : > { %p982_p5 = pnand %p981_p3, %p975_p10 }
  0xad   : > { %535 = vmatpush1.bf16.msra.mxu1 %v844_v14 }
  0xae   : > { %536 = vmatprep.subr.bf16.mxu1 %v845_v15 }
  0xb1   : > { %537 = vmatpush1.bf16.msra.mxu1 %v847_v16 }
  0xb2   : > { %538 = vmatprep.subr.bf16.mxu1 %v848_v17 }
  0xb5   : > { %539 = vmatpush1.bf16.msra.mxu1 %v850_v18 }
  0xb6   : > { %540 = vmatprep.subr.bf16.mxu1 %v851_v19 }
  0xb9   : > { %541 = vmatpush1.bf16.msra.mxu1 %v853_v20 }
 0x12e   : > { %v336_v32 = vpop.xlane.xlu0 %335 }
 0x12f   : > { %v340_v33 = vmul.f32 0.0078125, %v336_v32 }
 0x131   : > { %v342_v35 = vmul.f32 %v340_v33, %v340_v33 }
 0x132   : > { %v339_v34 = vpop.xlane.xlu0 %338 }
 0x133   : > { %v341_v36 = vmul.f32 0.0078125, %v339_v34 }
 0x135   : > { %v343_v37 = vsub.f32 %v341_v36, %v342_v35 }
 0x137   : > { %v344_v38 = vmax.f32 %v343_v37, 0.0 }
 0x139   : > { %v345_v40 = vadd.f32 1e-05, %v344_v38 }
 0x13b   : > { %854 = vrsqrt.f32 %v345_v40 }
 0x145   : > { %v855_v50 = vpop.eup %854 }
 0x175   : > { %v410_v25 = vpop.f32.mrb[0].mxu0 }
 0x176   : > { %v411_v26 = vadd.f32 %v714_v24, %v410_v25  ;;  %v747_v27 = vpop.f32.mrb[1].mxu0 }
 0x177   : > { %v413_v28 = vpop.f32.mrb[2].mxu0 }
 0x178   : > { %v416_v29 = vmax.f32 %v411_v26, 0.0  ;;  %v748_v30 = vpop.f32.mrb[3].mxu0 }
 0x17a   : > { %v417_v31 = vpack.c.bf16 %v416_v29, %v416_v29 }
 0x17c   : > { %559 = vmatmul.mubr.bf16.vlgmr.msra.gmra.mrb[0].mxu1 %v417_v31 }
 0x24f   : > { %v560_v46 = vpop.f32.mrb[0].mxu1 }
 0x250   : > { %v561_v47 = vadd.f32 %v560_v46, %v439_v44  ;;  %v562_v49 = vpop.f32.mrb[1].mxu1 }
 0x251   : > { %v564_v51 = vpop.f32.mrb[2].mxu1  ;;  %v563_v54 = vadd.f32 %v562_v49, %v443_v48 }
 0x252   : > { %v567_v52 = vmul.f32 %v855_v50, %v561_v47  ;;  %v565_v53 = vpop.f32.mrb[3].mxu1 }
 0x254   : > { %v569_v55 = vmul.f32 %v567_v52, %v340_v33  ;;  %v568_v56 = vmul.f32 %v567_v52, %v334_v22 }
 0x256   : > { %v570_v57 = vsub.f32 %v563_v54, %v569_v55 }
 0x258   : > { %v571_v58 = vadd.f32 %v570_v57, %v568_v56 }
 0x25a   : > { %572 = vst [vmem:[%s332_s13] sm:$0xff] %v571_v58 }
 0x25b   : > { %985 = shalt.err (!%p982_p5)
}
 0x25c   : > { %s986_s14 = scalar_lea.hbm %s1337_s17, 128  ;;  %s990_s30 = scalar_lea.hbm %s1387_s6, 256 }
 0x25d   : > { %p987_p1 = scmp.ne.s32.totalorder %s1337_s17, %s986_s14  ;;  %p991_p0 = scmp.lt.u32.totalorder %s1337_s17, %s1387_s6 }
 0x25e   : > { %p992_p9 = scmp.lt.u32.totalorder %s990_s30, %s986_s14  ;;  %p994_p2 = scmp.lt.u32.totalorder %s986_s14, %s1337_s17 }
 0x25f   : > { %p988_p8 = pnand %p987_p1, %p1410_p13 }
 0x260   : > { %p993_p12 = por %p992_p9, %p991_p0 }
 0x261   : > { %p989_p11 = pneg %p988_p8 }
 0x262   : > { %p995_p6 = por %p994_p2, %p993_p12 }
 0x264   : > { %p996_p10 = pnand %p995_p6, %p989_p11 }
 0x266   : > { %999 = shalt.err (!%p996_p10)
}
 0x267   : > { %761 = dma.vmem_to_hbm [thread:$0]  (%p1410_p13), %s1339_s11, 128, %s1337_s17, %s574_s9  }
 0x268 PF: > { %s599_s15 = sand.u32 1, %s1038_s21   ;;  %p1411_p4 = scmp.ne.s32.totalorder %s1395_s28, 0 }
 0x269   : > { %p1412_p7 = scmp.ge.s32.totalorder %s1050_s24, 2  ;;  %s600_s8 = scalar_lea.sflag [#allocation4], %s599_s15 }
 0x26b   : > { %p778_p3 = pnand %p1412_p7, %p1411_p4 }
 0x26d   : > { %1033 = dma.done.wait (!%p778_p3), %s600_s8, 128  }
 0x26e   : > { %1035 = vsyncadd (!%p778_p3), %s600_s8, 4294967168  ;;  %s1413_s2 = sld [smem:[#allocation16_spill]]  ;;  %p23_p5 = scmp.ge.s32.totalorder %s1209_s26, 4  }
 0x26f   : > { %s1414_s21 = smov %s1042_s22  ;;  %s1415_s22 = smov %s1046_s23 }
 0x270   : > { %s1417_s24 = smov %s1209_s26  ;;  %25 = sbr.rel (!%p23_p5) target bundleno = 11 (0xb), region = 110 }
 0x274   : > { %s1416_s23 = smov %s1413_s2 }
 0x277   :  { %605 = vsyncpa [#allocation3], 1 }
 0x278   :  { %607 = vsyncpa [#allocation3 + $0x1], 1 }
 0x279   :  { %608 = vsyncpa [#allocation6], 1 }
 0x27a   :  { %610 = vsyncpa [#allocation6 + $0x1], 1 }
 0x27b   :  { %611 = vsyncpa [#allocation9], 1 }
 0x27c   :  { %612 = vsyncpa [#allocation4], 1 }
 0x27d   :  { %614 = vsyncpa [#allocation4 + $0x1], 1 }

</bundles_post_ra>
